<compile_context>
chip_gen: v5e
topology: v5e:2x2
jax: 0.10.0
libtpu: 0.0.40
codegen_flags: <defaults>
</compile_context>

<pallas_src>
import functools

import jax
import jax.numpy as jnp
from jax.experimental import pallas as pl
from jax.experimental.pallas import tpu as pltpu

LANES = 128
SUBLANES = 8


def _round_up(x, m):
    return ((x + m - 1) // m) * m


def _bce_logits_kernel(yp_ref, yt_ref, out_ref, *, pos_weight, n_elems,
                       rows_per_tile, blocks_per_split, needs_mask):
    s = pl.program_id(0)   # per-core split axis ("parallel")
    i = pl.program_id(1)   # row-tile reduction axis ("arbitrary")

    @pl.when(i == 0)
    def _():
        out_ref[...] = jnp.zeros_like(out_ref)

    x = yp_ref[...].astype(jnp.float32)
    y = yt_ref[...].astype(jnp.float32)

    # Numerically stable BCEWithLogitsLoss with pos_weight p:
    #   l = p * y * softplus(-x) + (1 - y) * softplus(x)
    # softplus(z) = max(z, 0) + log1p(exp(-|z|))
    log1p_term = jnp.log1p(jnp.exp(-jnp.abs(x)))
    softplus_neg_x = jnp.maximum(-x, 0.0) + log1p_term   # softplus(-x)
    softplus_pos_x = jnp.maximum(x, 0.0) + log1p_term    # softplus(x)
    loss = pos_weight * y * softplus_neg_x + (1.0 - y) * softplus_pos_x

    if needs_mask:
        # Zero out contributions from padded elements (suffix of flat array).
        block_row0 = (s * blocks_per_split + i) * rows_per_tile
        row_idx = jax.lax.broadcasted_iota(jnp.int32, (rows_per_tile, LANES), 0)
        lane_idx = jax.lax.broadcasted_iota(jnp.int32, (rows_per_tile, LANES), 1)
        elem_idx = (block_row0 + row_idx) * LANES + lane_idx
        loss = jnp.where(elem_idx < n_elems, loss, 0.0)

    # Accumulate into the resident (8,128) output block: pure vreg adds,
    # no per-step cross-lane/sublane reduction and no scalar RMW store.
    out_ref[...] += jnp.sum(
        loss.reshape(rows_per_tile // SUBLANES, SUBLANES, LANES), axis=0)


def simple_loss_pallas(ypred, ytgt, pos_weight, *,
                       target_rows_per_tile=1024, num_splits=2):
    """Mean BCE-with-logits loss (scalar pos_weight) via a Pallas TPU kernel."""
    assert ypred.shape == ytgt.shape
    n_elems = int(ypred.size)

    # Lane-dense layout: rows of 128 lanes.
    rows = -(-n_elems // LANES)

    # Tile height: (8,128)-aligned, as large as sensible, capped for tiny inputs.
    rows_per_tile = min(target_rows_per_tile, _round_up(rows, SUBLANES))
    rows_per_tile = _round_up(rows_per_tile, SUBLANES)

    n_blocks = -(-rows // rows_per_tile)
    splits = num_splits if n_blocks >= num_splits else 1
    n_blocks = _round_up(n_blocks, splits)
    blocks_per_split = n_blocks // splits

    padded_rows = n_blocks * rows_per_tile
    pad = padded_rows * LANES - n_elems
    needs_mask = pad > 0

    flat_p = jnp.ravel(ypred)
    flat_t = jnp.ravel(ytgt)
    if pad:
        flat_p = jnp.pad(flat_p, (0, pad))
        flat_t = jnp.pad(flat_t, (0, pad))
    yp2 = flat_p.reshape(padded_rows, LANES)
    yt2 = flat_t.reshape(padded_rows, LANES)

    kernel = functools.partial(
        _bce_logits_kernel,
        pos_weight=float(pos_weight),
        n_elems=n_elems,
        rows_per_tile=rows_per_tile,
        blocks_per_split=blocks_per_split,
        needs_mask=needs_mask,
    )

    in_map = lambda s, i: (s * blocks_per_split + i, 0)

    partials = pl.pallas_call(
        kernel,
        out_shape=jax.ShapeDtypeStruct((splits * SUBLANES, LANES), jnp.float32),
        grid_spec=pltpu.PrefetchScalarGridSpec(
            num_scalar_prefetch=0,
            grid=(splits, blocks_per_split),
            in_specs=[
                pl.BlockSpec((rows_per_tile, LANES), in_map),
                pl.BlockSpec((rows_per_tile, LANES), in_map),
            ],
            out_specs=pl.BlockSpec((SUBLANES, LANES), lambda s, i: (s, 0)),
        ),
        compiler_params=pltpu.CompilerParams(
            dimension_semantics=("parallel", "arbitrary"),
        ),
    )(yp2, yt2)

    # Tiny epilogue reduce + mean in the wrapper.
    return jnp.sum(partials) / jnp.float32(n_elems)


def _reference_loss(ypred, ytgt, pos_weight):
    x = ypred.astype(jnp.float32)
    y = ytgt.astype(jnp.float32)
    loss = -(pos_weight * y * jax.nn.log_sigmoid(x)
             + (1.0 - y) * jax.nn.log_sigmoid(-x))
    return jnp.mean(loss)


if __name__ == "__main__":
    key = jax.random.PRNGKey(0)
    k1, k2, k3, k4 = jax.random.split(key, 4)

    # Small NCHW logits / targets consistent with the module's forward.
    B, C, H, W = 2, 4, 16, 16
    ypred = jax.random.normal(k1, (B, C, H, W), dtype=jnp.float32)
    ytgt = (jax.random.uniform(k2, (B, C, H, W)) > 0.5).astype(jnp.float32)
    pos_weight = 2.13  # deterministic "init" of the module's pos_weight param

    loss = jax.block_until_ready(simple_loss_pallas(ypred, ytgt, pos_weight))
    ref = jax.block_until_ready(_reference_loss(ypred, ytgt, pos_weight))
    assert jnp.allclose(loss, ref, rtol=1e-5, atol=1e-6), (loss, ref)

    # Ragged shape exercising the pad + in-kernel mask remainder path.
    yp_r = jax.random.normal(k3, (2, 3, 5, 7), dtype=jnp.float32)
    yt_r = (jax.random.uniform(k4, (2, 3, 5, 7)) > 0.5).astype(jnp.float32)
    loss_r = jax.block_until_ready(simple_loss_pallas(yp_r, yt_r, pos_weight))
    ref_r = jax.block_until_ready(_reference_loss(yp_r, yt_r, pos_weight))
    assert jnp.allclose(loss_r, ref_r, rtol=1e-5, atol=1e-6), (loss_r, ref_r)

    print("KERNEL_OK")
</pallas_src>

<mosaic_0001>
module attributes {stable_mosaic.version = 11 : i64} {
  func.func @_bce_logits_kernel(%arg0: i32, %arg1: i32, %arg2: memref<16x128xf32, #tpu.memory_space<vmem>>, %arg3: memref<16x128xf32, #tpu.memory_space<vmem>>, %arg4: memref<8x128xf32, #tpu.memory_space<vmem>>) attributes {dimension_semantics = [#tpu.dimension_semantics<parallel>, #tpu.dimension_semantics<arbitrary>], iteration_bounds = array<i64: 1, 1>, scalar_prefetch = 0 : i64, scratch_operands = 0 : i64, tpu.core_type = #tpu.core_type<tc>, window_params = [{transform_indices = @transform_0, window_bounds = array<i64: 16, 128>}, {transform_indices = @transform_1, window_bounds = array<i64: 16, 128>}, {transform_indices = @transform_2, window_bounds = array<i64: 8, 128>}]} {
    %c0_i32 = arith.constant 0 : i32
    %0 = arith.cmpi eq, %arg1, %c0_i32 : i32
    %1 = arith.extui %0 : i1 to i32
    %c0_i32_0 = arith.constant 0 : i32
    %2 = arith.cmpi ne, %1, %c0_i32_0 : i32
    scf.if %2 {
      %cst_14 = arith.constant 0.000000e+00 : f32
      %30 = vector.broadcast %cst_14 : f32 to vector<8x128xf32>
      %c0_15 = arith.constant 0 : index
      %c0_16 = arith.constant 0 : index
      %31 = vector.load %arg4[%c0_15, %c0_16] : memref<8x128xf32, #tpu.memory_space<vmem>>, vector<8x128xf32>
      tpu.vector_store %arg4[%c0_15, %c0_16], %30 {strides = array<i32>} : memref<8x128xf32, #tpu.memory_space<vmem>>, vector<8x128xf32>,
    } else {
    }
    %c0 = arith.constant 0 : index
    %c0_1 = arith.constant 0 : index
    %3 = vector.load %arg2[%c0, %c0_1] : memref<16x128xf32, #tpu.memory_space<vmem>>, vector<16x128xf32>
    %c0_2 = arith.constant 0 : index
    %c0_3 = arith.constant 0 : index
    %4 = vector.load %arg3[%c0_2, %c0_3] : memref<16x128xf32, #tpu.memory_space<vmem>>, vector<16x128xf32>
    %5 = math.absf %3 : vector<16x128xf32>
    %cst = arith.constant 0.000000e+00 : f32
    %6 = vector.broadcast %cst : f32 to vector<16x128xf32>
    %7 = arith.subf %6, %5 : vector<16x128xf32>
    %8 = math.exp %7 : vector<16x128xf32>
    %9 = math.log1p %8 : vector<16x128xf32>
    %cst_4 = arith.constant 0.000000e+00 : f32
    %10 = vector.broadcast %cst_4 : f32 to vector<16x128xf32>
    %11 = arith.subf %10, %3 : vector<16x128xf32>
    %cst_5 = arith.constant 0.000000e+00 : f32
    %12 = vector.broadcast %cst_5 : f32 to vector<16x128xf32>
    %13 = arith.maximumf %11, %12 : vector<16x128xf32>
    %14 = arith.addf %13, %9 : vector<16x128xf32>
    %cst_6 = arith.constant 0.000000e+00 : f32
    %15 = vector.broadcast %cst_6 : f32 to vector<16x128xf32>
    %16 = arith.maximumf %3, %15 : vector<16x128xf32>
    %17 = arith.addf %16, %9 : vector<16x128xf32>
    %cst_7 = arith.constant 2.130000e+00 : f32
    %18 = vector.broadcast %cst_7 : f32 to vector<16x128xf32>
    %19 = arith.mulf %18, %4 : vector<16x128xf32>
    %20 = arith.mulf %19, %14 : vector<16x128xf32>
    %cst_8 = arith.constant 1.000000e+00 : f32
    %21 = vector.broadcast %cst_8 : f32 to vector<16x128xf32>
    %22 = arith.subf %21, %4 : vector<16x128xf32>
    %23 = arith.mulf %22, %17 : vector<16x128xf32>
    %24 = arith.addf %20, %23 : vector<16x128xf32>
    %c0_9 = arith.constant 0 : index
    %c0_10 = arith.constant 0 : index
    %25 = vector.load %arg4[%c0_9, %c0_10] : memref<8x128xf32, #tpu.memory_space<vmem>>, vector<8x128xf32>
    %26 = vector.shape_cast %24 : vector<16x128xf32> to vector<2x8x128xf32>
    %cst_11 = arith.constant dense<0.000000e+00> : vector<8x128xf32>
    %27 = vector.multi_reduction <add>, %26, %cst_11 [0] : vector<2x8x128xf32> to vector<8x128xf32>
    %28 = arith.addf %25, %27 : vector<8x128xf32>
    %c0_12 = arith.constant 0 : index
    %c0_13 = arith.constant 0 : index
    %29 = vector.load %arg4[%c0_12, %c0_13] : memref<8x128xf32, #tpu.memory_space<vmem>>, vector<8x128xf32>
    tpu.vector_store %arg4[%c0_12, %c0_13], %28 {strides = array<i32>} : memref<8x128xf32, #tpu.memory_space<vmem>>, vector<8x128xf32>,
    return
  }
  func.func @transform_0(%arg0: i32, %arg1: i32) -> (i32, i32) {
    %c1_i32 = arith.constant 1 : i32
    %0 = arith.muli %arg0, %c1_i32 : i32
    %1 = arith.addi %0, %arg1 : i32
    %c0_i32 = arith.constant 0 : i32
    %c0_i32_0 = arith.constant 0 : i32
    return %1, %c0_i32 : i32, i32
  }
  func.func @transform_1(%arg0: i32, %arg1: i32) -> (i32, i32) {
    %c1_i32 = arith.constant 1 : i32
    %0 = arith.muli %arg0, %c1_i32 : i32
    %1 = arith.addi %0, %arg1 : i32
    %c0_i32 = arith.constant 0 : i32
    %c0_i32_0 = arith.constant 0 : i32
    return %1, %c0_i32 : i32, i32
  }
  func.func @transform_2(%arg0: i32, %arg1: i32) -> (i32, i32) {
    %c0_i32 = arith.constant 0 : i32
    %c0_i32_0 = arith.constant 0 : i32
    return %arg0, %c0_i32 : i32, i32
  }
}

</mosaic_0001>

<bundles_post_ra>
// kernel: tpu_custom_call.1
= control target key start
LH: loop header
LB: loop body
LE: loop exit
PB: predicated region body
PF: predicated region fallthrough
CT: control target
= control target key end

     0   :  { %7 = vsyncpa [#allocation3], 0  ;;  %s254_s0 = inlined_call_operand.hbm [shape: f32[16,128], index: 0, kind: input, shape index: {}]   ;;  %s255_s1 = inlined_call_operand.hbm [shape: f32[16,128], index: 1, kind: input, shape index: {}]   ;;  %s256_s2 = inlined_call_operand.hbm [shape: f32[8,128], index: 2, kind: output, shape index: {}]  }
   0x1   :  { %8 = vsyncpa [#allocation6], 0 }
   0x2   :  { %9 = vsyncpa [#allocation4], 0  ;;  %s18_s11 = sshll.u32 %s254_s0, 4  ;;  %s225_s12 = smov [#allocation2]   ;;  %s19_s11 = int_to_ptr.hbm [resolvable:$true] %s18_s11 }
   0x3   :  { %s20_s13 = sshll.u32 %s225_s12, 4  ;;  %s35_s16 = sshll.u32 %s255_s1, 4  ;;  %s21_s13 = int_to_ptr.vmem [resolvable:$true] %s20_s13  ;;  %s36_s16 = int_to_ptr.hbm [resolvable:$true] %s35_s16 }
   0x4   :  { %s226_s17 = smov 128   ;;  %s227_s18 = smov 8  }
   0x5   :  { %26 = dma.hbm_to_vmem [thread:$0]  %s19_s11, 256, %s21_s13, [#allocation3], %s226_s17, %s226_s17, %s227_s18  }
   0x6   :  { %s228_s19 = smov [#allocation5]  }
   0x7   :  { %s37_s20 = sshll.u32 %s228_s19, 4  ;;  %s38_s20 = int_to_ptr.vmem [resolvable:$true] %s37_s20 }
   0x8   :  { %43 = dma.hbm_to_vmem [thread:$0]  %s36_s16, 256, %s38_s20, [#allocation6], %s226_s17, %s226_s17, %s227_s18  }
   0x9   :  { %219 = dma.done.wait [#allocation3], 256  }
   0xa   :  { %220 = vsyncadd [#allocation3], 4294967040 }
   0xb   :  { %221 = dma.done.wait [#allocation6], 256  }
   0xc   :  { %222 = vsyncadd [#allocation6], 4294967040  ;;  %v61_v0 = vld [vmem:[#allocation2] sm:$0xff]  ;;  %v62_v1 = vld [vmem:[#allocation2 + $0x8] sm:$0xff]  ;;  %s229_s0 = smov [#allocation7]   ;;  %s122_s23 = sshll.u32 %s256_s2, 4  ;;  %s123_s23 = int_to_ptr.hbm [resolvable:$true] %s122_s23 }
   0xd   :  { %v65_v2 = vand.u32 2147483647, %v61_v0  ;;  %v66_v3 = vand.u32 2147483647, %v62_v1  ;;  %v91_v17 = vsub.f32 0.0, %v61_v0  ;;  %v92_v19 = vsub.f32 0.0, %v62_v1 }
   0xe   :  { %v63_v20 = vld [vmem:[#allocation5] sm:$0xff]  ;;  %v64_v23 = vld [vmem:[#allocation5 + $0x8] sm:$0xff]  ;;  %v97_v26 = vmax.f32 %v61_v0, 0.0  ;;  %v98_v30 = vmax.f32 %v62_v1, 0.0  ;;  %s120_s1 = sshll.u32 %s229_s0, 4  ;;  %s121_s1 = int_to_ptr.vmem [resolvable:$true] %s120_s1 }
   0xf   :  { %v67_v4 = vsub.f32 0.0, %v65_v2  ;;  %v68_v5 = vsub.f32 0.0, %v66_v3  ;;  %v93_v25 = vmax.f32 %v91_v17, 0.0  ;;  %v94_v29 = vmax.f32 %v92_v19, 0.0 }
  0x10   :  { %v101_v32 = vmul.f32 2.13, %v63_v20  ;;  %v105_v33 = vsub.f32 1.0, %v63_v20  ;;  %v102_v35 = vmul.f32 2.13, %v64_v23  ;;  %v106_v36 = vsub.f32 1.0, %v64_v23 }
  0x11   :  { %v69_v6 = vmul.f32 1.442695, %v67_v4  ;;  %v71_v7 = vmul.f32 1.442695, %v68_v5 }
  0x13   :  { %139 = vpow2.f32 %v69_v6 }
  0x14   :  { %141 = vpow2.f32 %v71_v7 }
  0x19   :  { %v140_v8 = vpop.eup %139 }
  0x1a   :  { %v142_v9 = vpop.eup %141  ;;  %v73_v10 = vadd.f32 1.0, %v140_v8  ;;  %v76_v11 = vmul.f32 -0.5, %v140_v8  ;;  %v79_v15 = vand.u32 2147483647, %v140_v8 }
  0x1b   :  { %v82_v12 = vadd.f32 1.0, %v142_v9  ;;  %v85_v13 = vmul.f32 -0.5, %v142_v9  ;;  %v88_v18 = vand.u32 2147483647, %v142_v9 }
  0x1c   :  { %143 = vlog2.f32 %v73_v10  ;;  %v77_v14 = vadd.f32 1.0, %v76_v11  ;;  %vm80_vm0 = vcmp.lt.f32.partialorder %v79_v15, 0.0004427343 }
  0x1d   :  { %145 = vlog2.f32 %v82_v12  ;;  %v86_v16 = vadd.f32 1.0, %v85_v13  ;;  %vm89_vm1 = vcmp.lt.f32.partialorder %v88_v18, 0.0004427343 }
  0x1e   :  { %v78_v21 = vmul.f32 %v140_v8, %v77_v14 }
  0x1f   :  { %v87_v24 = vmul.f32 %v142_v9, %v86_v16 }
  0x22   :  { %v144_v22 = vpop.eup %143 }
  0x23   :  { %v146_v27 = vpop.eup %145  ;;  %v75_v28 = vmul.f32 0.6931472, %v144_v22 }
  0x24   :  { %v84_v31 = vmul.f32 0.6931472, %v146_v27 }
  0x25   :  { %v81_v34 = vsel %vm80_vm0, %v78_v21, %v75_v28 }
  0x26   :  { %v90_v37 = vsel %vm89_vm1, %v87_v24, %v84_v31  ;;  %v95_v38 = vadd.f32 %v93_v25, %v81_v34  ;;  %v99_v39 = vadd.f32 %v97_v26, %v81_v34 }
  0x27   :  { %v96_v40 = vadd.f32 %v94_v29, %v90_v37  ;;  %v100_v41 = vadd.f32 %v98_v30, %v90_v37 }
  0x28   :  { %v103_v42 = vmul.f32 %v101_v32, %v95_v38  ;;  %v107_v43 = vmul.f32 %v105_v33, %v99_v39 }
  0x29   :  { %v104_v44 = vmul.f32 %v102_v35, %v96_v40  ;;  %v108_v45 = vmul.f32 %v106_v36, %v100_v41 }
  0x2a   :  { %v109_v46 = vadd.f32 %v107_v43, %v103_v42 }
  0x2b   :  { %v110_v47 = vadd.f32 %v108_v45, %v104_v44 }
  0x2d   :  { %v112_v48 = vadd.f32 %v110_v47, %v109_v46 }
  0x2f   :  { %114 = vst [vmem:[#allocation7] sm:$0xff] %v112_v48 }
  0x30   :  { %125 = dma.vmem_to_hbm [thread:$0]  %s121_s1, 128, %s123_s23, [#allocation4]  }
  0x31   :  { %223 = dma.done.wait [#allocation4], 128  }
  0x32   :  { %224 = vsyncadd [#allocation4], 4294967168 }
  0x33   :  { %130 = vsyncpa [#allocation3], 1 }
  0x34   :  { %131 = vsyncpa [#allocation6], 1 }
  0x35   :  { %132 = vsyncpa [#allocation4], 1 }

</bundles_post_ra>
